<compile_context>
chip_gen: v7x
topology: tpu7x:2x2x1
jax: 0.10.0
libtpu: 0.0.40
codegen_flags: <defaults>
</compile_context>

<pallas_src>
import functools

import jax
import jax.numpy as jnp
from jax.experimental import pallas as pl
from jax.experimental.pallas import tpu as pltpu


def _round_up(x, m):
    return (x + m - 1) // m * m


def _dam_channel_kernel(gamma_ref, xb_ref, xr_ref, o_ref, *, tc, c_valid):
    """One (batch, channel-row-tile) step of DAM channel attention.

    gamma_ref : SMEM (1,) f32           scalar-prefetched gamma
    xb_ref    : VMEM (1, Cp, Lp) bf16   all channels (keys / values / queries)
    xr_ref    : VMEM (1, tc, Lp) f32    this row tile of x (exact residual)
    o_ref     : VMEM (1, tc, Lp) f32    output row tile
    """
    i = pl.program_id(1)
    row0 = pl.multiple_of(i * tc, tc)

    kv = xb_ref[0]                          # (Cp, Lp) bf16
    q = xb_ref[0, pl.ds(row0, tc), :]       # (tc, Lp) bf16 — slice of the resident block
    xr = xr_ref[0]                          # (tc, Lp) f32

    # energy = q @ kv^T  (bf16 operands, f32 accumulation on the MXU)
    energy = jax.lax.dot_general(
        q, kv, (((1,), (1,)), ((), ())),
        preferred_element_type=jnp.float32)                      # (tc, Cp)

    cp = energy.shape[-1]
    if c_valid < cp:
        # mask padded channel columns out of the softmax
        col = jax.lax.broadcasted_iota(jnp.int32, energy.shape, 1)
        valid = col < c_valid
        m = jnp.max(jnp.where(valid, energy, -jnp.inf), axis=-1, keepdims=True)
        logits = jnp.where(valid, m - energy, -jnp.inf)
    else:
        m = jnp.max(energy, axis=-1, keepdims=True)
        logits = m - energy

    # numerically-stable softmax over the channel axis (f32, EUP exp + reciprocal)
    lmax = jnp.max(logits, axis=-1, keepdims=True)
    p = jnp.exp(logits - lmax)
    denom = jnp.sum(p, axis=-1, keepdims=True)
    attn = p * pl.reciprocal(denom, approx=True)                 # (tc, Cp) f32

    # out = attention @ V  (bf16 operands, f32 accumulation)
    out = jnp.dot(attn.astype(jnp.bfloat16), kv,
                  preferred_element_type=jnp.float32)            # (tc, Lp)

    g = gamma_ref[0]
    o_ref[0] = (g * out + xr).astype(o_ref.dtype)                # fused gamma*out + x


def dam_channel(x_nchw, gamma, *, row_tile=128):
    """Pallas DAM_Channel forward. x: (N, C, H, W) f32, gamma: scalar. Returns (N, C, H, W) f32."""
    N, C, H, W = x_nchw.shape
    L = H * W
    Cp = _round_up(C, 128)          # lane-dense channel axis (energy / attention last dim)
    Lp = _round_up(L, 128)          # lane-dense spatial axis (output last dim)
    TC = min(row_tile, Cp)          # Cp is a multiple of 128, so TC=128 always divides it

    x3 = x_nchw.reshape(N, C, L).astype(jnp.float32)
    if (C, L) != (Cp, Lp):
        x3 = jnp.pad(x3, ((0, 0), (0, Cp - C), (0, Lp - L)))
    xb = x3.astype(jnp.bfloat16)    # bf16 copy feeds the MXU; f32 copy feeds the residual
    gamma_arr = jnp.asarray(gamma, jnp.float32).reshape(1)

    # TODO(synk): for very large H*W (kv block >> VMEM), tile the gram-matmul reduction over L
    # with an f32 energy accumulator (flash-style) instead of holding the full (Cp, Lp) block.
    out = pl.pallas_call(
        functools.partial(_dam_channel_kernel, tc=TC, c_valid=C),
        out_shape=jax.ShapeDtypeStruct((N, Cp, Lp), jnp.float32),
        grid_spec=pltpu.PrefetchScalarGridSpec(
            num_scalar_prefetch=1,                      # gamma -> SMEM
            grid=(N, Cp // TC),
            in_specs=[
                # bf16 keys/values/queries: whole channel dim, constant across row tiles
                pl.BlockSpec((1, Cp, Lp), lambda n, i, g: (n, 0, 0)),
                # f32 residual rows for this tile
                pl.BlockSpec((1, TC, Lp), lambda n, i, g: (n, i, 0)),
            ],
            out_specs=pl.BlockSpec((1, TC, Lp), lambda n, i, g: (n, i, 0)),
        ),
        compiler_params=pltpu.CompilerParams(
            dimension_semantics=("parallel", "parallel")),
    )(gamma_arr, xb, x3)

    return out[:, :C, :L].reshape(N, C, H, W)


def _dam_channel_ref(x, gamma):
    """Pure-JAX reference with the same bf16 operand casts (f32 accumulation / softmax)."""
    N, C, H, W = x.shape
    v = x.reshape(N, C, H * W)
    vb = v.astype(jnp.bfloat16)
    energy = jnp.einsum("ncl,nkl->nck", vb, vb,
                        preferred_element_type=jnp.float32)
    m = jnp.max(energy, axis=-1, keepdims=True)
    attn = jax.nn.softmax(m - energy, axis=-1)
    out = jnp.einsum("nck,nkl->ncl", attn.astype(jnp.bfloat16), vb,
                     preferred_element_type=jnp.float32).reshape(N, C, H, W)
    return gamma * out + x


if __name__ == "__main__":
    N, C, H, W = 2, 64, 16, 16
    key = jax.random.PRNGKey(0)
    x = jax.random.normal(key, (N, C, H, W), jnp.float32)

    # PyTorch initializes gamma = 0 (identity); use a nonzero value so the attention
    # path is actually exercised, plus a gamma = 0 identity check below.
    gamma = jnp.float32(0.5)

    out = jax.block_until_ready(dam_channel(x, gamma))
    assert out.shape == (N, C, H, W), out.shape
    assert bool(jnp.all(jnp.isfinite(out)))

    ref = _dam_channel_ref(x, gamma)
    max_err = float(jnp.max(jnp.abs(out - ref)))
    assert max_err < 5e-2, f"max abs err vs reference: {max_err}"

    # gamma = 0 -> module is the identity (matches nn.Parameter(torch.zeros(1)) init)
    out0 = jax.block_until_ready(dam_channel(x, jnp.float32(0.0)))
    assert bool(jnp.allclose(out0, x, rtol=0.0, atol=1e-6))

    print("KERNEL_OK")
</pallas_src>

<mosaic_0001>
module attributes {stable_mosaic.version = 11 : i64} {
  func.func @_dam_channel_kernel(%arg0: i32, %arg1: i32, %arg2: memref<1xf32, #tpu.memory_space<smem>>, %arg3: memref<1x128x256xbf16, #tpu.memory_space<vmem>>, %arg4: memref<1x128x256xf32, #tpu.memory_space<vmem>>, %arg5: memref<1x128x256xf32, #tpu.memory_space<vmem>>) attributes {dimension_semantics = [#tpu.dimension_semantics<parallel>, #tpu.dimension_semantics<parallel>], iteration_bounds = array<i64: 2, 1>, scalar_prefetch = 1 : i64, scratch_operands = 0 : i64, tpu.core_type = #tpu.core_type<tc>, window_params = [{transform_indices = @transform_0, window_bounds = array<i64: 1, 128, 256>}, {transform_indices = @transform_1, window_bounds = array<i64: 1, 128, 256>}, {transform_indices = @transform_2, window_bounds = array<i64: 1, 128, 256>}]} {
    %c128_i32 = arith.constant 128 : i32
    %0 = arith.muli %arg1, %c128_i32 : i32
    %1 = tpu.assume_multiple %0, 128 : i32
    %c0 = arith.constant 0 : index
    %c0_0 = arith.constant 0 : index
    %c0_1 = arith.constant 0 : index
    %2 = vector.load %arg3[%c0, %c0_0, %c0_1] : memref<1x128x256xbf16, #tpu.memory_space<vmem>>, vector<1x128x256xbf16>
    %3 = vector.shape_cast %2 : vector<1x128x256xbf16> to vector<128x256xbf16>
    %c0_2 = arith.constant 0 : index
    %4 = arith.index_cast %1 : i32 to index
    %c0_3 = arith.constant 0 : index
    %5 = vector.load %arg3[%c0_2, %4, %c0_3] : memref<1x128x256xbf16, #tpu.memory_space<vmem>>, vector<1x128x256xbf16>
    %6 = vector.shape_cast %5 : vector<1x128x256xbf16> to vector<128x256xbf16>
    %c0_4 = arith.constant 0 : index
    %c0_5 = arith.constant 0 : index
    %c0_6 = arith.constant 0 : index
    %7 = vector.load %arg4[%c0_4, %c0_5, %c0_6] : memref<1x128x256xf32, #tpu.memory_space<vmem>>, vector<1x128x256xf32>
    %8 = vector.shape_cast %7 : vector<1x128x256xf32> to vector<128x256xf32>
    %cst = arith.constant dense<0.000000e+00> : vector<128x128xf32>
    %9 = tpu.matmul %6, %3, %cst {dimension_numbers = #tpu.dot_dimension_numbers<[1], [1], [0], [0], [0, 0, 1, 0], [], []>} : vector<128x256xbf16>, vector<128x256xbf16>, vector<128x128xf32> -> vector<128x128xf32>
    %10 = tpu.iota {dimensions = array<i32: 1>} : vector<128x128xi32>
    %c64_i32 = arith.constant 64 : i32
    %11 = vector.broadcast %c64_i32 : i32 to vector<128x128xi32>
    %12 = arith.cmpi slt, %10, %11 : vector<128x128xi32>
    %cst_7 = arith.constant 0xFF800000 : f32
    %13 = vector.broadcast %cst_7 : f32 to vector<128x128xf32>
    %14 = arith.select %12, %9, %13 : vector<128x128xi1>, vector<128x128xf32>
    %cst_8 = arith.constant dense<0xFF800000> : vector<128xf32>
    %15 = vector.multi_reduction <maximumf>, %14, %cst_8 [1] : vector<128x128xf32> to vector<128xf32>
    %16 = vector.shape_cast %15 : vector<128xf32> to vector<128x1xf32>
    %17 = vector.broadcast %16 : vector<128x1xf32> to vector<128x128xf32>
    %18 = arith.subf %17, %9 : vector<128x128xf32>
    %cst_9 = arith.constant 0xFF800000 : f32
    %19 = vector.broadcast %cst_9 : f32 to vector<128x128xf32>
    %20 = arith.select %12, %18, %19 : vector<128x128xi1>, vector<128x128xf32>
    %cst_10 = arith.constant dense<0xFF800000> : vector<128xf32>
    %21 = vector.multi_reduction <maximumf>, %20, %cst_10 [1] : vector<128x128xf32> to vector<128xf32>
    %22 = vector.shape_cast %21 : vector<128xf32> to vector<128x1xf32>
    %23 = vector.broadcast %22 : vector<128x1xf32> to vector<128x128xf32>
    %24 = arith.subf %20, %23 : vector<128x128xf32>
    %25 = math.exp %24 : vector<128x128xf32>
    %cst_11 = arith.constant dense<0.000000e+00> : vector<128xf32>
    %26 = vector.multi_reduction <add>, %25, %cst_11 [1] : vector<128x128xf32> to vector<128xf32>
    %27 = vector.shape_cast %26 : vector<128xf32> to vector<128x1xf32>
    %28 = tpu.reciprocal %27 {approx = true} : vector<128x1xf32> -> vector<128x1xf32>
    %29 = vector.broadcast %28 : vector<128x1xf32> to vector<128x128xf32>
    %30 = arith.mulf %25, %29 : vector<128x128xf32>
    %31 = arith.truncf %30 : vector<128x128xf32> to vector<128x128xbf16>
    %cst_12 = arith.constant dense<0.000000e+00> : vector<128x256xf32>
    %32 = tpu.matmul %31, %3, %cst_12 {dimension_numbers = #tpu.dot_dimension_numbers<[1], [0], [0], [1], [0, 0, 1, 1], [], []>} : vector<128x128xbf16>, vector<128x256xbf16>, vector<128x256xf32> -> vector<128x256xf32>
    %c0_13 = arith.constant 0 : index
    %33 = memref.load %arg2[%c0_13] : memref<1xf32, #tpu.memory_space<smem>>
    %34 = vector.broadcast %33 : f32 to vector<128x256xf32>
    %35 = arith.mulf %34, %32 : vector<128x256xf32>
    %36 = arith.addf %35, %8 : vector<128x256xf32>
    %c0_14 = arith.constant 0 : index
    %c0_15 = arith.constant 0 : index
    %c0_16 = arith.constant 0 : index
    %37 = vector.load %arg5[%c0_14, %c0_15, %c0_16] : memref<1x128x256xf32, #tpu.memory_space<vmem>>, vector<1x128x256xf32>
    %38 = vector.shape_cast %37 : vector<1x128x256xf32> to vector<128x256xf32>
    %39 = vector.shape_cast %36 : vector<128x256xf32> to vector<1x128x256xf32>
    tpu.vector_store %arg5[%c0_14, %c0_15, %c0_16], %39 {strides = array<i32>} : memref<1x128x256xf32, #tpu.memory_space<vmem>>, vector<1x128x256xf32>,
    return
  }
  func.func @transform_0(%arg0: i32, %arg1: i32, %arg2: memref<1xf32, #tpu.memory_space<smem>>) -> (i32, i32, i32) {
    %c0_i32 = arith.constant 0 : i32
    %c0_i32_0 = arith.constant 0 : i32
    %c0_i32_1 = arith.constant 0 : i32
    return %arg0, %c0_i32, %c0_i32_0 : i32, i32, i32
  }
  func.func @transform_1(%arg0: i32, %arg1: i32, %arg2: memref<1xf32, #tpu.memory_space<smem>>) -> (i32, i32, i32) {
    %c0_i32 = arith.constant 0 : i32
    %c0_i32_0 = arith.constant 0 : i32
    return %arg0, %arg1, %c0_i32 : i32, i32, i32
  }
  func.func @transform_2(%arg0: i32, %arg1: i32, %arg2: memref<1xf32, #tpu.memory_space<smem>>) -> (i32, i32, i32) {
    %c0_i32 = arith.constant 0 : i32
    %c0_i32_0 = arith.constant 0 : i32
    return %arg0, %arg1, %c0_i32 : i32, i32, i32
  }
}

</mosaic_0001>

<bundles_post_ra>
// kernel: tpu_custom_call.1
= control target key start
LH: loop header
LB: loop body
LE: loop exit
PB: predicated region body
PF: predicated region fallthrough
CT: control target
= control target key end

     0   :  { %s2142_s0 = inlined_call_operand.<no memory space> [shape: f32[1], index: 0, kind: input, shape index: {}]   ;;  %s2143_s1 = inlined_call_operand.hbm [shape: bf16[2,128,256], index: 1, kind: input, shape index: {}]   ;;  %s2144_s2 = inlined_call_operand.hbm [shape: f32[2,128,256], index: 2, kind: input, shape index: {}]   ;;  %s2145_s3 = inlined_call_operand.hbm [shape: f32[2,128,256], index: 3, kind: output, shape index: {}]  }
   0x1   :  { %8 = sst [smem:[#allocation3]] %s2142_s0 }
   0x2   :  { %9 = vsyncpa [#allocation5], 0 }
   0x3   :  { %11 = vsyncpa [#allocation5 + $0x1], 0 }
   0x4   :  { %12 = vsyncpa [#allocation8], 0 }
   0x5   :  { %14 = vsyncpa [#allocation8 + $0x1], 0 }
   0x6   :  { %15 = vsyncpa [#allocation6], 0 }
   0x7   :  { %17 = vsyncpa [#allocation6 + $0x1], 0  ;;  %s1525_s14 = smov 0   ;;  %s1527_s15 = smov 0  }
   0x8   :  { %s1529_s16 = smov 0   ;;  %s1531_s17 = smov 0  }
   0x9   :  { %s1533_s18 = smov 0   ;;  %s1535_s19 = smov 0  }
   0xa LB: > { %s1128_s0 = sadd.s32 4294967295, %s1490_s19   ;;  %s1129_s20 = sadd.s32 4294967294, %s1490_s19   ;;  %s1490_s19 = sphi %s1535_s19, %s23_s19   ;;  %s1486_s18 = sphi %s1533_s18, %s2163_s18   ;;  %s1482_s17 = sphi %s1531_s17, %s2162_s17   ;;  %s1478_s16 = sphi %s1529_s16, %s2161_s16   ;;  %s1474_s15 = sphi %s1527_s15, %s2160_s15   ;;  %s1470_s14 = sphi %s1525_s14, %s2159_s14  }
   0xb   : > { %s35_s21 = sadd.s32 1, %s1486_s18  ;;  %s42_s22 = sadd.s32 1, %s1478_s16 }
   0xc   : > { %p37_p0 = scmp.ge.s32.totalorder %s35_s21, 2  ;;  %p49_p1 = scmp.ne.s32.totalorder %s1478_s16, %s1474_s15 }
   0xd   : > { %p50_p2 = scmp.eq.s32.totalorder %s1490_s19, 0  ;;  %p55_p3 = scmp.ne.s32.totalorder %s1474_s15, %s1470_s14 }
   0xe   : > { %s2165_s21 = smov (%p37_p0, %s35_s21), 0  ;;  %p56_p5 = scmp.eq.s32.totalorder %s1128_s0, 0 }
   0xf   : > { %p1566_p4 = por %p50_p2, %p49_p1  ;;  %s39_s24 = ssub.s32 %s1486_s18, %s2165_s21 }
  0x10   : > { %p109_p6 = scmp.eq.s32.totalorder %s1128_s0, 1  ;;  %p40_p7 = scmp.eq.s32.totalorder %s39_s24, 0 }
  0x11   : > { %p1572_p8 = por %p56_p5, %p55_p3  ;;  %p115_p10 = scmp.eq.s32.totalorder %s1129_s20, 1 }
  0x12   : > { %p1576_p9 = por %p109_p6, %p49_p1  ;;  %p1199_p13 = scmp.lt.s32.totalorder %s1490_s19, 2 }
  0x13   : > { %s2149_s25 = scalar_select %p1572_p8, 1, 0 }
  0x14   : > { %s2150_s26 = scalar_select %p1576_p9, 1, 0 }
  0x15   : > { %s1581_s27 = scalar_select %p40_p7, %s1478_s16, %s42_s22  }
  0x16   : > { %p1583_p11 = por %p115_p10, %p55_p3  ;;  %s1590_s29 = sand.u32 1, %s1478_s16  }
  0x17   : > { %s1132_s30 = sshll.u32 %s1590_s29, 7  ;;  %s1179_s4 = sshll.u32 %s1486_s18, 11 }
  0x18   : > { %s2151_s28 = scalar_select %p1583_p11, 1, 0 }
  0x19   : > { %s1597_s7 = scalar_lea.hbm %s2143_s1, %s1179_s4  ;;  %s139_s8 = scalar_lea.vmem [#allocation4], %s1132_s30 }
  0x1a   : > { %s146_s9 = sshll.u32 %s139_s8, 4  ;;  %p1603_p0 = pnand %p1199_p13, %p1566_p4  ;;  %s1599_s9 = int_to_ptr.vmem [resolvable:$true] %s146_s9 }
  0x1b   : > { %s136_s11 = scalar_lea.sflag [#allocation5], %s1590_s29  ;;  %s1344_s12 = scalar_lea.hbm %s1597_s7, 2048 }
  0x1c   : > { %p1345_p2 = scmp.ne.s32.totalorder %s1597_s7, %s1344_s12  ;;  %p1346_p3 = pneg %p1603_p0 }
  0x1d   : > { %s1349_s20 = scalar_lea.hbm %s2143_s1, 4096  ;;  %p1350_p4 = scmp.lt.u32.totalorder %s1597_s7, %s2143_s1 }
  0x1e   : > { %p1347_p5 = pnand %p1346_p3, %p1345_p2  ;;  %p1351_p7 = scmp.lt.u32.totalorder %s1349_s20, %s1344_s12 }
  0x1f   : > { %p1353_p13 = scmp.lt.u32.totalorder %s1344_s12, %s1597_s7 }
  0x20   : > { %p1348_p6 = pneg %p1347_p5  ;;  %p1352_p10 = por %p1351_p7, %p1350_p4 }
  0x22   : > { %p1354_p12 = por %p1353_p13, %p1352_p10 }
  0x24   : > { %p1355_p1 = pnand %p1354_p12, %p1348_p6 }
  0x26   : > { %1358 = shalt.err (!%p1355_p1)
}
  0x27   : > { %s1359_s24 = scalar_lea.vmem %s1599_s9, 2048  ;;  %s1492_s30 = smov [#allocation4]  }
  0x28   : > { %p1360_p2 = scmp.ne.s32.totalorder %s1599_s9, %s1359_s24  ;;  %s1364_s4 = sshll.u32 %s1492_s30, 4  ;;  %s1365_s4 = int_to_ptr.vmem [resolvable:$false] %s1364_s4 }
  0x29   : > { %s1366_s5 = scalar_lea.vmem %s1365_s4, 4096  ;;  %p1367_p9 = scmp.lt.s32.totalorder %s1599_s9, %s1365_s4 }
  0x2a   : > { %p1362_p5 = pnand %p1360_p2, %p1346_p3  ;;  %p1368_p4 = scmp.lt.s32.totalorder %s1366_s5, %s1359_s24 }
  0x2c   : > { %p1363_p11 = pneg %p1362_p5  ;;  %p1369_p7 = por %p1368_p4, %p1367_p9 }
  0x2e   : > { %p1370_p10 = pnand %p1369_p7, %p1363_p11 }
  0x30   : > { %1373 = shalt.err (!%p1370_p10)
}
  0x31   : > { %s1493_s6 = smov 128   ;;  %s1494_s8 = smov 8  }
  0x32   : > { %1191 = dma.hbm_to_vmem [thread:$0]  (!%p1603_p0), %s1597_s7, 2048, %s1599_s9, %s136_s11, %s1493_s6, %s1493_s6, %s1494_s8  }
  0x33   : > { %p178_p12 = scmp.lt.s32.totalorder %s1490_s19, 3  ;;  %s1135_s12 = sshll.u32 %s1590_s29, 8 }
  0x34   : > { %s1180_s13 = sshll.u32 %s1486_s18, 12  ;;  %p2153_p9 = scmp.ge.s32.totalorder %s1490_s19, 1 }
  0x35   : > { %s1648_s23 = scalar_lea.hbm %s2144_s2, %s1180_s13  ;;  %s160_s24 = scalar_lea.vmem [#allocation7], %s1135_s12 }
  0x36   : > { %p1641_p11 = pnand %p2153_p9, %p178_p12  ;;  %s170_s30 = sshll.u32 %s160_s24, 4  ;;  %s1650_s30 = int_to_ptr.vmem [resolvable:$true] %s170_s30 }
  0x37   : > { %s157_s7 = scalar_lea.sflag [#allocation8], %s1590_s29  ;;  %s1374_s9 = scalar_lea.hbm %s1648_s23, 4096 }
  0x38   : > { %p1375_p1 = scmp.ne.s32.totalorder %s1648_s23, %s1374_s9  ;;  %s1379_s5 = scalar_lea.hbm %s2144_s2, 8192 }
  0x39   : > { %p1380_p2 = scmp.lt.u32.totalorder %s1648_s23, %s2144_s2  ;;  %p1381_p5 = scmp.lt.u32.totalorder %s1379_s5, %s1374_s9 }
  0x3a   : > { %p1377_p6 = pnand %p1375_p1, %p1346_p3  ;;  %p1383_p7 = scmp.lt.u32.totalorder %s1374_s9, %s1648_s23 }
  0x3b   : > { %p1382_p4 = por %p1381_p5, %p1380_p2 }
  0x3c   : > { %p1378_p13 = pneg %p1377_p6 }
  0x3d   : > { %p1384_p10 = por %p1383_p7, %p1382_p4 }
  0x3f   : > { %p1385_p12 = pnand %p1384_p10, %p1378_p13 }
  0x41   : > { %1388 = shalt.err (!%p1385_p12)
}
  0x42   : > { %s1389_s12 = scalar_lea.vmem %s1650_s30, 4096  ;;  %s1495_s13 = smov [#allocation7]  }
  0x43   : > { %p1390_p9 = scmp.ne.s32.totalorder %s1650_s30, %s1389_s12  ;;  %s1394_s20 = sshll.u32 %s1495_s13, 4  ;;  %s1395_s20 = int_to_ptr.vmem [resolvable:$false] %s1394_s20 }
  0x44   : > { %s1396_s22 = scalar_lea.vmem %s1395_s20, 8192  ;;  %p1397_p8 = scmp.lt.s32.totalorder %s1650_s30, %s1395_s20 }
  0x45   : > { %p1392_p1 = pnand %p1390_p9, %p1346_p3  ;;  %p1398_p2 = scmp.lt.s32.totalorder %s1396_s22, %s1389_s12 }
  0x47   : > { %p1393_p6 = pneg %p1392_p1  ;;  %p1399_p5 = por %p1398_p2, %p1397_p8 }
  0x49   : > { %p1400_p4 = pnand %p1399_p5, %p1393_p6 }
  0x4b   : > { %1403 = shalt.err (!%p1400_p4)
}
  0x4c   : > { %s1496_s24 = smov 256   ;;  %s1497_s9 = smov 16  }
  0x4d   : > { %1194 = dma.hbm_to_vmem [thread:$0]  (!%p1603_p0), %s1648_s23, 4096, %s1650_s30, %s157_s7, %s1496_s24, %s1496_s24, %s1497_s9  }
  0x4e   : > { %182 = sbr.rel (%p1641_p11) target bundleno = 1120 (0x460), region = 28  ;;  %s1681_s11 = sand.u32 (!%p1641_p11), 1, %s1474_s15  }
  0x4f   : > { %s1139_s4 = sshll.u32 (!%p1641_p11), %s1681_s11, 7  ;;  %s185_s5 = scalar_lea.sflag (!%p1641_p11), [#allocation5], %s1681_s11 }
  0x50   : > { %s1685_s6 = scalar_lea.vmem (!%p1641_p11), [#allocation4], %s1139_s4  ;;  %p2155_p8 = scmp.ne.s32.totalorder (!%p1641_p11), %s2149_s25, 0 }
  0x55   : > { %1457 = dma.done.wait (%p2155_p8), %s185_s5, 2048  }
  0x56   : > { %1459 = vsyncadd (%p2155_p8), %s185_s5, 4294965248  ;;  %s1140_s29 = sshll.u32 %s1681_s11, 8  ;;  %s194_s10 = scalar_lea.sflag [#allocation8], %s1681_s11 }
  0x57   : > { %s1695_s0 = scalar_lea.vmem [#allocation7], %s1140_s29 }
  0x58   : > { %1461 = dma.done.wait (%p2155_p8), %s194_s10, 4096  }
  0x59   : > { %1463 = vsyncadd (%p2155_p8), %s194_s10, 4294963200  ;;  %v1256_v0 = vld [vmem:[%s1685_s6 + $0x4] ss:$8 sps:$4 sm:$0xff]   ;;  %v1258_v1 = vld [vmem:[%s1685_s6] ss:$8 sps:$4 sm:$0xff]   ;;  %v553_v16 = vlaneseq  ;;  %s901_s25 = sld [smem:[#allocation3]] }
  0x5a   : > { %456 = vmatprep.subr.bf16.mxu0 %v1256_v0  ;;  %v1259_v2 = vld [vmem:[%s1685_s6 + $0x14] ss:$8 sps:$4 sm:$0xff]   ;;  %488 = vmatprep.mubr.bf16.mxu0 %v1256_v0  ;;  %v1261_v3 = vld [vmem:[%s1685_s6 + $0x10] ss:$8 sps:$4 sm:$0xff]   ;;  %v1262_v4 = vld [vmem:[%s1685_s6 + $0x24] ss:$8 sps:$4 sm:$0xff]  }
  0x5b   : > { %457 = vmatpush1.bf16.xpose.msra.mxu0 %v1258_v1  ;;  %788 = vmatprep.subr.bf16.mxu1 %v1256_v0  ;;  %v1264_v5 = vld [vmem:[%s1685_s6 + $0x20] ss:$8 sps:$4 sm:$0xff]   ;;  %v1265_v6 = vld [vmem:[%s1685_s6 + $0x34] ss:$8 sps:$4 sm:$0xff]   ;;  %v1267_v7 = vld [vmem:[%s1685_s6 + $0x30] ss:$8 sps:$4 sm:$0xff]  }
  0x5c   : > { %458 = vmatprep.subr.bf16.mxu0 %v1259_v2  ;;  %789 = vmatpush1.bf16.msra.mxu1 %v1258_v1  ;;  %v1268_v8 = vld [vmem:[%s1685_s6 + $0x44] ss:$8 sps:$4 sm:$0xff]   ;;  %v1270_v9 = vld [vmem:[%s1685_s6 + $0x40] ss:$8 sps:$4 sm:$0xff]   ;;  %v1271_v10 = vld [vmem:[%s1685_s6 + $0x54] ss:$8 sps:$4 sm:$0xff]  }
  0x5d   : > { %790 = vmatprep.subr.bf16.mxu1 %v1259_v2  ;;  %v1273_v11 = vld [vmem:[%s1685_s6 + $0x50] ss:$8 sps:$4 sm:$0xff]   ;;  %v1274_v12 = vld [vmem:[%s1685_s6 + $0x64] ss:$8 sps:$4 sm:$0xff]   ;;  %v1276_v13 = vld [vmem:[%s1685_s6 + $0x60] ss:$8 sps:$4 sm:$0xff]  }
  0x5e   : > { %v1277_v14 = vld [vmem:[%s1685_s6 + $0x74] ss:$8 sps:$4 sm:$0xff]   ;;  %v1279_v15 = vld [vmem:[%s1685_s6 + $0x70] ss:$8 sps:$4 sm:$0xff]   ;;  %v1717_v17 = vand.u32 127, %v553_v16  ;;  %s1996_s23 = scalar_lea.vmem [#allocation9], %s1140_s29 }
  0x5f   : > { %s1181_s30 = sshll.u32 %s1482_s17, 12  ;;  %s1016_s7 = sshll.u32 %s1996_s23, 4  ;;  %s2090_s7 = int_to_ptr.vmem [resolvable:$true] %s1016_s7 }
  0x60   : > { %791 = vmatpush1.bf16.msra.mxu1 %v1261_v3  ;;  %vm555_vm0 = vcmp.lt.s32.totalorder %v1717_v17, 64  ;;  %s2088_s13 = scalar_lea.hbm %s2145_s3, %s1181_s30  ;;  %s1000_s17 = scalar_lea.sflag [#allocation6], %s1681_s11 }
  0x61   : > { %792 = vmatprep.subr.bf16.mxu1 %v1262_v4  ;;  %s1404_s20 = scalar_lea.vmem %s2090_s7, 4096  ;;  %p2156_p3 = scmp.ne.s32.totalorder %s2150_s26, 0 }
  0x62   : > { %p1405_p0 = scmp.ne.s32.totalorder %s2090_s7, %s1404_s20  ;;  %s1499_s22 = smov [#allocation9]  }
  0x63   : > { %459 = vmatpush1.bf16.xpose.msra.mxu0 %v1261_v3  ;;  %s1408_s24 = sshll.u32 %s1499_s22, 4  ;;  %s1409_s24 = int_to_ptr.vmem [resolvable:$false] %s1408_s24 }
  0x64   : > { %460 = vmatprep.subr.bf16.mxu0 %v1262_v4  ;;  %793 = vmatpush1.bf16.msra.mxu1 %v1264_v5  ;;  %p1406_p11 = pnand %p1405_p0, %p2156_p3  ;;  %s1410_s9 = scalar_lea.vmem %s1409_s24, 8192 }
  0x65   : > { %794 = vmatprep.subr.bf16.mxu1 %v1265_v6  ;;  %p1411_p7 = scmp.lt.s32.totalorder %s2090_s7, %s1409_s24  ;;  %p1412_p10 = scmp.lt.s32.totalorder %s1410_s9, %s1404_s20 }
  0x66   : > { %p1407_p13 = pneg %p1406_p11 }
  0x67   : > { %p1413_p12 = por %p1412_p10, %p1411_p7 }
  0x68   : > { %795 = vmatpush1.bf16.msra.mxu1 %v1267_v7 }
  0x69   : > { %796 = vmatprep.subr.bf16.mxu1 %v1268_v8  ;;  %p1414_p9 = pnand %p1413_p12, %p1407_p13 }
  0x6b   : > { %461 = vmatpush1.bf16.xpose.msra.mxu0 %v1264_v5 }
  0x6c   : > { %462 = vmatprep.subr.bf16.mxu0 %v1265_v6  ;;  %797 = vmatpush1.bf16.msra.mxu1 %v1270_v9 }
  0x6d   : > { %798 = vmatprep.subr.bf16.mxu1 %v1271_v10 }
  0x70   : > { %799 = vmatpush1.bf16.msra.mxu1 %v1273_v11 }
  0x71   : > { %800 = vmatprep.subr.bf16.mxu1 %v1274_v12 }
  0x73   : > { %463 = vmatpush1.bf16.xpose.msra.mxu0 %v1267_v7 }
  0x74   : > { %464 = vmatprep.subr.bf16.mxu0 %v1268_v8  ;;  %801 = vmatpush1.bf16.msra.mxu1 %v1276_v13 }
  0x75   : > { %802 = vmatprep.subr.bf16.mxu1 %v1277_v14 }
  0x78   : > { %803 = vmatpush1.bf16.msra.mxu1 %v1279_v15 }
  0x7b   : > { %465 = vmatpush1.bf16.xpose.msra.mxu0 %v1270_v9 }
  0x7c   : > { %466 = vmatprep.subr.bf16.mxu0 %v1271_v10 }
  0x83   : > { %467 = vmatpush1.bf16.xpose.msra.mxu0 %v1273_v11 }
  0x84   : > { %468 = vmatprep.subr.bf16.mxu0 %v1274_v12 }
  0x8b   : > { %469 = vmatpush1.bf16.xpose.msra.mxu0 %v1276_v13 }
  0x8c   : > { %470 = vmatprep.subr.bf16.mxu0 %v1277_v14 }
  0x93   : > { %471 = vmatpush1.bf16.xpose.msra.mxu0 %v1279_v15 }
  0x9a   : > { %489 = vmatmul.mubr.bf16.vlgmr.msra.gmra.mrb[0].mxu0 %v1258_v1 }
  0x9b   : > { %496 = vmatprep.mubr.bf16.mxu0 %v1259_v2 }
  0xa2   : > { %497 = vmatmul.mubr.bf16.gmra.mrb[4].mxu0 %v1261_v3 }
  0xa3   : > { %504 = vmatprep.mubr.bf16.mxu0 %v1262_v4 }
  0xaa   : > { %505 = vmatmul.mubr.bf16.gmra.mrb[8].mxu0 %v1264_v5 }
  0xab   : > { %512 = vmatprep.mubr.bf16.mxu0 %v1265_v6 }
  0xb2   : > { %513 = vmatmul.mubr.bf16.gmra.mrb[12].mxu0 %v1267_v7 }
  0xb3   : > { %520 = vmatprep.mubr.bf16.mxu0 %v1268_v8 }
  0xba   : > { %521 = vmatmul.mubr.bf16.gmra.mrb[16].mxu0 %v1270_v9 }
  0xbb   : > { %528 = vmatprep.mubr.bf16.mxu0 %v1271_v10 }
  0xc2   : > { %529 = vmatmul.mubr.bf16.gmra.mrb[20].mxu0 %v1273_v11 }
  0xc3   : > { %536 = vmatprep.mubr.bf16.mxu0 %v1274_v12 }
  0xca   : > { %537 = vmatmul.mubr.bf16.gmra.mrb[24].mxu0 %v1276_v13 }
  0xcb   : > { %544 = vmatprep.mubr.bf16.mxu0 %v1277_v14 }
  0xd2   : > { %545 = vmatmul.mubr.bf16.gmra.mrb[28].mxu0 %v1279_v15 }
 0x16d   : > { %v1720_v18 = vpop.f32.mrb[0].mxu0 }
 0x16e   : > { %v492_v19 = vpop.f32.mrb[1].mxu0  ;;  %v556_v20 = vsel %vm555_vm0, %v1720_v18, -inf }
 0x16f   : > { %572 = vmax.xlane.f32.xlu0 %v556_v20  ;;  %v1725_v21 = vpop.f32.mrb[2].mxu0 }
 0x170   : > { %v495_v22 = vpop.f32.mrb[3].mxu0  ;;  %v557_v23 = vsel %vm555_vm0, %v1725_v21, -inf }
 0x173   : > { %574 = vmax.xlane.f32.xlu0 %v557_v23 }
 0x175   : > { %v1730_v24 = vpop.f32.mrb[4].mxu0 }
 0x176   : > { %v500_v25 = vpop.f32.mrb[5].mxu0  ;;  %v558_v26 = vsel %vm555_vm0, %v1730_v24, -inf }
 0x177   : > { %576 = vmax.xlane.f32.xlu1 %v558_v26  ;;  %v1735_v27 = vpop.f32.mrb[6].mxu0 }
 0x178   : > { %v503_v28 = vpop.f32.mrb[7].mxu0  ;;  %v559_v29 = vsel %vm555_vm0, %v1735_v27, -inf }
 0x17b   : > { %578 = vmax.xlane.f32.xlu1 %v559_v29 }
 0x17d   : > { %v1740_v30 = vpop.f32.mrb[8].mxu0 }
 0x17e   : > { %v508_v31 = vpop.f32.mrb[9].mxu0  ;;  %v560_v32 = vsel %vm555_vm0, %v1740_v30, -inf }
 0x17f   : > { %580 = vmax.xlane.f32.xlu0 %v560_v32  ;;  %v1745_v33 = vpop.f32.mrb[10].mxu0 }
 0x180   : > { %v511_v34 = vpop.f32.mrb[11].mxu0  ;;  %v561_v35 = vsel %vm555_vm0, %v1745_v33, -inf }
 0x181   : > { %582 = vmax.xlane.f32.xlu1 %v561_v35 }
 0x185   : > { %v1750_v36 = vpop.f32.mrb[12].mxu0 }
 0x186   : > { %v516_v37 = vpop.f32.mrb[13].mxu0  ;;  %v562_v38 = vsel %vm555_vm0, %v1750_v36, -inf }
 0x187   : > { %584 = vmax.xlane.f32.xlu0 %v562_v38  ;;  %v1755_v39 = vpop.f32.mrb[14].mxu0 }
 0x188   : > { %v519_v40 = vpop.f32.mrb[15].mxu0  ;;  %v563_v41 = vsel %vm555_vm0, %v1755_v39, -inf }
 0x189   : > { %586 = vmax.xlane.f32.xlu1 %v563_v41 }
 0x18d   : > { %v1760_v42 = vpop.f32.mrb[16].mxu0 }
 0x18e   : > { %v524_v43 = vpop.f32.mrb[17].mxu0  ;;  %v564_v44 = vsel %vm555_vm0, %v1760_v42, -inf }
 0x18f   : > { %588 = vmax.xlane.f32.xlu0 %v564_v44  ;;  %v1765_v45 = vpop.f32.mrb[18].mxu0 }
 0x190   : > { %v527_v46 = vpop.f32.mrb[19].mxu0  ;;  %v565_v47 = vsel %vm555_vm0, %v1765_v45, -inf }
 0x191   : > { %590 = vmax.xlane.f32.xlu1 %v565_v47 }
 0x195   : > { %v1770_v48 = vpop.f32.mrb[20].mxu0 }
 0x196   : > { %v532_v49 = vpop.f32.mrb[21].mxu0  ;;  %v566_v50 = vsel %vm555_vm0, %v1770_v48, -inf }
 0x197   : > { %592 = vmax.xlane.f32.xlu0 %v566_v50  ;;  %v1775_v51 = vpop.f32.mrb[22].mxu0 }
 0x198   : > { %v535_v52 = vpop.f32.mrb[23].mxu0  ;;  %v567_v53 = vsel %vm555_vm0, %v1775_v51, -inf }
 0x199   : > { %594 = vmax.xlane.f32.xlu1 %v567_v53 }
 0x19d   : > { %v1780_v54 = vpop.f32.mrb[24].mxu0 }
 0x19e   : > { %v540_v55 = vpop.f32.mrb[25].mxu0  ;;  %v568_v56 = vsel %vm555_vm0, %v1780_v54, -inf }
 0x19f   : > { %596 = vmax.xlane.f32.xlu0 %v568_v56  ;;  %v1785_v57 = vpop.f32.mrb[26].mxu0 }
 0x1a0   : > { %v543_v58 = vpop.f32.mrb[27].mxu0  ;;  %v569_v59 = vsel %vm555_vm0, %v1785_v57, -inf }
 0x1a1   : > { %598 = vmax.xlane.f32.xlu1 %v569_v59 }
 0x1a5   : > { %v1790_v60 = vpop.f32.mrb[28].mxu0 }
 0x1a6   : > { %v548_v61 = vpop.f32.mrb[29].mxu0  ;;  %v570_v62 = vsel %vm555_vm0, %v1790_v60, -inf }
 0x1a7   : > { %600 = vmax.xlane.f32.xlu0 %v570_v62  ;;  %v1795_v63 = vpop.f32.mrb[30].mxu0 }
 0x1a8   : > { %v551_v0 = vpop.f32.mrb[31].mxu0  ;;  %v571_v1 = vsel %vm555_vm0, %v1795_v63, -inf }
 0x1a9   : > { %602 = vmax.xlane.f32.xlu1 %v571_v1 }
 0x1fc   : > { %v573_v2 = vpop.xlane.xlu0 %572 }
 0x1fd   : > { %v604_v3 = vsub.f32 %v573_v2, %v1720_v18 }
 0x1ff   : > { %v1803_v4 = vsel %vm555_vm0, %v604_v3, -inf }
 0x200   : > { %v575_v5 = vpop.xlane.xlu0 %574  ;;  %636 = vmax.xlane.f32.xlu0 %v1803_v4 }
 0x201   : > { %v605_v6 = vsub.f32 %v575_v5, %v1725_v21 }
 0x203   : > { %v1809_v7 = vsel %vm555_vm0, %v605_v6, -inf }
 0x204   : > { %v577_v8 = vpop.xlane.xlu1 %576  ;;  %638 = vmax.xlane.f32.xlu1 %v1809_v7 }
 0x205   : > { %v606_v9 = vsub.f32 %v577_v8, %v1730_v24 }
 0x207   : > { %v1815_v10 = vsel %vm555_vm0, %v606_v9, -inf }
 0x208   : > { %v579_v11 = vpop.xlane.xlu1 %578  ;;  %640 = vmax.xlane.f32.xlu0 %v1815_v10 }
 0x209   : > { %v607_v12 = vsub.f32 %v579_v11, %v1735_v27 }
 0x20b   : > { %v1821_v13 = vsel %vm555_vm0, %v607_v12, -inf }
 0x20c   : > { %v581_v14 = vpop.xlane.xlu0 %580  ;;  %642 = vmax.xlane.f32.xlu1 %v1821_v13 }
 0x20d   : > { %v608_v15 = vsub.f32 %v581_v14, %v1740_v30 }
 0x20e   : > { %v583_v16 = vpop.xlane.xlu1 %582 }
 0x20f   : > { %v609_v18 = vsub.f32 %v583_v16, %v1745_v33  ;;  %v1828_v19 = vsel %vm555_vm0, %v608_v15, -inf }
 0x210   : > { %644 = vmax.xlane.f32.xlu0 %v1828_v19 }
 0x211   : > { %v1833_v20 = vsel %vm555_vm0, %v609_v18, -inf }
 0x212   : > { %646 = vmax.xlane.f32.xlu1 %v1833_v20 }
 0x214   : > { %v585_v21 = vpop.xlane.xlu0 %584 }
 0x215   : > { %v610_v22 = vsub.f32 %v585_v21, %v1750_v36 }
 0x216   : > { %v587_v23 = vpop.xlane.xlu1 %586 }
 0x217   : > { %v611_v24 = vsub.f32 %v587_v23, %v1755_v39  ;;  %v1840_v25 = vsel %vm555_vm0, %v610_v22, -inf }
 0x218   : > { %648 = vmax.xlane.f32.xlu0 %v1840_v25 }
 0x219   : > { %v1845_v26 = vsel %vm555_vm0, %v611_v24, -inf }
 0x21a   : > { %650 = vmax.xlane.f32.xlu1 %v1845_v26 }
 0x21c   : > { %v589_v27 = vpop.xlane.xlu0 %588 }
 0x21d   : > { %v612_v28 = vsub.f32 %v589_v27, %v1760_v42 }
 0x21e   : > { %v591_v29 = vpop.xlane.xlu1 %590 }
 0x21f   : > { %v613_v30 = vsub.f32 %v591_v29, %v1765_v45  ;;  %v1852_v31 = vsel %vm555_vm0, %v612_v28, -inf }
 0x220   : > { %652 = vmax.xlane.f32.xlu0 %v1852_v31 }
 0x221   : > { %v1857_v32 = vsel %vm555_vm0, %v613_v30, -inf }
 0x222   : > { %654 = vmax.xlane.f32.xlu1 %v1857_v32 }
 0x224   : > { %v593_v33 = vpop.xlane.xlu0 %592 }
 0x225   : > { %v614_v34 = vsub.f32 %v593_v33, %v1770_v48  ;;  %v1498_v33 = vmov 0  }
 0x226   : > { %v595_v35 = vpop.xlane.xlu1 %594  ;;  %820 = vmatprep.mubr.bf16.mxu1 %v1498_v33 }
 0x227   : > { %v615_v36 = vsub.f32 %v595_v35, %v1775_v51  ;;  %v1864_v37 = vsel %vm555_vm0, %v614_v34, -inf }
 0x228   : > { %656 = vmax.xlane.f32.xlu0 %v1864_v37 }
 0x229   : > { %v1869_v38 = vsel %vm555_vm0, %v615_v36, -inf }
 0x22a   : > { %658 = vmax.xlane.f32.xlu1 %v1869_v38 }
 0x22c   : > { %v597_v39 = vpop.xlane.xlu0 %596 }
 0x22d   : > { %v616_v40 = vsub.f32 %v597_v39, %v1780_v54 }
 0x22e   : > { %v599_v41 = vpop.xlane.xlu1 %598 }
 0x22f   : > { %v617_v42 = vsub.f32 %v599_v41, %v1785_v57  ;;  %v1876_v43 = vsel %vm555_vm0, %v616_v40, -inf }
 0x230   : > { %660 = vmax.xlane.f32.xlu0 %v1876_v43 }
 0x231   : > { %v1881_v44 = vsel %vm555_vm0, %v617_v42, -inf }
 0x232   : > { %662 = vmax.xlane.f32.xlu1 %v1881_v44 }
 0x234   : > { %v601_v45 = vpop.xlane.xlu0 %600 }
 0x235   : > { %v618_v46 = vsub.f32 %v601_v45, %v1790_v60 }
 0x236   : > { %v603_v47 = vpop.xlane.xlu1 %602 }
 0x237   : > { %v619_v48 = vsub.f32 %v603_v47, %v1795_v63  ;;  %v1888_v49 = vsel %vm555_vm0, %v618_v46, -inf }
 0x238   : > { %664 = vmax.xlane.f32.xlu0 %v1888_v49 }
 0x239   : > { %v1893_v50 = vsel %vm555_vm0, %v619_v48, -inf }
 0x23a   : > { %666 = vmax.xlane.f32.xlu1 %v1893_v50 }
 0x28d   : > { %v637_v51 = vpop.xlane.xlu0 %636 }
 0x28e   : > { %v668_v52 = vsub.f32 %v1803_v4, %v637_v51 }
 0x290   : > { %v684_v53 = vmul.f32 1.442695, %v668_v52 }
 0x291   : > { %v639_v54 = vpop.xlane.xlu1 %638 }
 0x292   : > { %1280 = vpow2.f32 %v684_v53  ;;  %v669_v55 = vsub.f32 %v1809_v7, %v639_v54 }
 0x294   : > { %v686_v56 = vmul.f32 1.442695, %v669_v55 }
 0x295   : > { %v641_v57 = vpop.xlane.xlu0 %640 }
 0x296   : > { %1282 = vpow2.f32 %v686_v56  ;;  %v670_v58 = vsub.f32 %v1815_v10, %v641_v57 }
 0x298   : > { %v688_v59 = vmul.f32 1.442695, %v670_v58 }
 0x299   : > { %v643_v60 = vpop.xlane.xlu1 %642 }
 0x29a   : > { %1284 = vpow2.f32 %v688_v59  ;;  %v671_v17 = vsub.f32 %v1821_v13, %v643_v60 }
 0x29c   : > { %v1900_v61 = vpop.eup %1280  ;;  %v690_v62 = vmul.f32 1.442695, %v671_v17 }
 0x29d   : > { %716 = vadd.xlane.f32.xlu0 %v1900_v61  ;;  %v645_v63 = vpop.xlane.xlu0 %644 }
 0x29e   : > { %1286 = vpow2.f32 %v690_v62  ;;  %v672_v0 = vsub.f32 %v1828_v19, %v645_v63 }
 0x29f   : > { %v647_v1 = vpop.xlane.xlu1 %646 }
 0x2a0   : > { %v1904_v2 = vpop.eup %1282  ;;  %v692_v3 = vmul.f32 1.442695, %v672_v0  ;;  %v673_v4 = vsub.f32 %v1833_v20, %v647_v1 }
 0x2a1   : > { %718 = vadd.xlane.f32.xlu1 %v1904_v2 }
 0x2a2   : > { %1288 = vpow2.f32 %v692_v3  ;;  %v694_v5 = vmul.f32 1.442695, %v673_v4 }
 0x2a4   : > { %v1908_v6 = vpop.eup %1284  ;;  %1290 = vpow2.f32 %v694_v5 }
 0x2a5   : > { %720 = vadd.xlane.f32.xlu0 %v1908_v6  ;;  %v649_v7 = vpop.xlane.xlu0 %648 }
 0x2a6   : > { %v674_v8 = vsub.f32 %v1840_v25, %v649_v7 }
 0x2a7   : > { %v651_v9 = vpop.xlane.xlu1 %650 }
 0x2a8   : > { %v1912_v10 = vpop.eup %1286  ;;  %v696_v11 = vmul.f32 1.442695, %v674_v8  ;;  %v675_v12 = vsub.f32 %v1845_v26, %v651_v9 }
 0x2a9   : > { %722 = vadd.xlane.f32.xlu1 %v1912_v10 }
 0x2aa   : > { %1292 = vpow2.f32 %v696_v11  ;;  %v698_v13 = vmul.f32 1.442695, %v675_v12 }
 0x2ac   : > { %v1916_v14 = vpop.eup %1288  ;;  %1294 = vpow2.f32 %v698_v13 }
 0x2ad   : > { %724 = vadd.xlane.f32.xlu0 %v1916_v14  ;;  %v653_v15 = vpop.xlane.xlu0 %652 }
 0x2ae   : > { %v1919_v16 = vpop.eup %1290  ;;  %v676_v18 = vsub.f32 %v1852_v31, %v653_v15 }
 0x2af   : > { %726 = vadd.xlane.f32.xlu1 %v1919_v16  ;;  %v655_v19 = vpop.xlane.xlu1 %654 }
 0x2b0   : > { %v700_v20 = vmul.f32 1.442695, %v676_v18  ;;  %v677_v21 = vsub.f32 %v1857_v32, %v655_v19 }
 0x2b2   : > { %1296 = vpow2.f32 %v700_v20  ;;  %v702_v22 = vmul.f32 1.442695, %v677_v21 }
 0x2b4   : > { %v1924_v23 = vpop.eup %1292  ;;  %1298 = vpow2.f32 %v702_v22 }
 0x2b5   : > { %728 = vadd.xlane.f32.xlu0 %v1924_v23  ;;  %v657_v24 = vpop.xlane.xlu0 %656 }
 0x2b6   : > { %v1927_v25 = vpop.eup %1294  ;;  %v678_v26 = vsub.f32 %v1864_v37, %v657_v24 }
 0x2b7   : > { %730 = vadd.xlane.f32.xlu1 %v1927_v25  ;;  %v659_v27 = vpop.xlane.xlu1 %658 }
 0x2b8   : > { %v704_v28 = vmul.f32 1.442695, %v678_v26  ;;  %v679_v29 = vsub.f32 %v1869_v38, %v659_v27 }
 0x2ba   : > { %1300 = vpow2.f32 %v704_v28  ;;  %v706_v30 = vmul.f32 1.442695, %v679_v29 }
 0x2bc   : > { %v1932_v31 = vpop.eup %1296  ;;  %1302 = vpow2.f32 %v706_v30 }
 0x2bd   : > { %732 = vadd.xlane.f32.xlu0 %v1932_v31  ;;  %v661_v32 = vpop.xlane.xlu0 %660 }
 0x2be   : > { %v1936_v34 = vpop.eup %1298  ;;  %v680_v35 = vsub.f32 %v1876_v43, %v661_v32 }
 0x2bf   : > { %734 = vadd.xlane.f32.xlu1 %v1936_v34  ;;  %v663_v36 = vpop.xlane.xlu1 %662 }
 0x2c0   : > { %v708_v37 = vmul.f32 1.442695, %v680_v35  ;;  %v681_v38 = vsub.f32 %v1881_v44, %v663_v36 }
 0x2c2   : > { %1304 = vpow2.f32 %v708_v37  ;;  %v710_v39 = vmul.f32 1.442695, %v681_v38 }
 0x2c4   : > { %v1941_v40 = vpop.eup %1300  ;;  %1306 = vpow2.f32 %v710_v39 }
 0x2c5   : > { %736 = vadd.xlane.f32.xlu0 %v1941_v40  ;;  %v665_v41 = vpop.xlane.xlu0 %664 }
 0x2c6   : > { %v1944_v42 = vpop.eup %1302  ;;  %v682_v45 = vsub.f32 %v1888_v49, %v665_v41 }
 0x2c7   : > { %738 = vadd.xlane.f32.xlu1 %v1944_v42  ;;  %v667_v43 = vpop.xlane.xlu1 %666 }
 0x2c8   : > { %v712_v46 = vmul.f32 1.442695, %v682_v45  ;;  %v683_v47 = vsub.f32 %v1893_v50, %v667_v43 }
 0x2ca   : > { %1308 = vpow2.f32 %v712_v46  ;;  %v714_v44 = vmul.f32 1.442695, %v683_v47  ;;  %v1984_v46 = vstv %s901_s25  ;;  %v264_v47 = vld [vmem:[%s1695_s0] sm:$0xff] }
 0x2cc   : > { %v1949_v48 = vpop.eup %1304  ;;  %1310 = vpow2.f32 %v714_v44 }
 0x2cd   : > { %740 = vadd.xlane.f32.xlu0 %v1949_v48 }
 0x2ce   : > { %v1952_v51 = vpop.eup %1306 }
 0x2cf   : > { %742 = vadd.xlane.f32.xlu1 %v1952_v51 }
 0x2d4   : > { %v1955_v52 = vpop.eup %1308 }
 0x2d5   : > { %744 = vadd.xlane.f32.xlu0 %v1955_v52 }
 0x2d6   : > { %v1958_v49 = vpop.eup %1310 }
 0x2d7   : > { %746 = vadd.xlane.f32.xlu1 %v1958_v49 }
 0x32a   : > { %v717_v50 = vpop.xlane.xlu0 %716 }
 0x32b   : > { %1312 = vrcp.f32 %v717_v50 }
 0x32e   : > { %v719_v53 = vpop.xlane.xlu1 %718 }
 0x32f   : > { %1314 = vrcp.f32 %v719_v53 }
 0x332   : > { %v721_v54 = vpop.xlane.xlu0 %720 }
 0x333   : > { %1316 = vrcp.f32 %v721_v54 }
 0x335   : > { %v1313_v56 = vpop.eup %1312 }
 0x336   : > { %v723_v55 = vpop.xlane.xlu1 %722  ;;  %v764_v59 = vmul.f32 %v1313_v56, %v1900_v61 }
 0x337   : > { %1318 = vrcp.f32 %v723_v55  ;;  %v267_v55 = vld [vmem:[%s1695_s0 + $0x18] sm:$0xff] }
 0x339   : > { %v1315_v57 = vpop.eup %1314 }
 0x33a   : > { %v725_v58 = vpop.xlane.xlu0 %724  ;;  %v765_v60 = vmul.f32 %v1315_v57, %v1904_v2 }
 0x33b   : > { %1320 = vrcp.f32 %v725_v58 }
 0x33c   : > { %v727_v17 = vpop.xlane.xlu1 %726  ;;  %v780_v62 = vpack.c.bf16 %v765_v60, %v764_v59 }
 0x33d   : > { %1322 = vrcp.f32 %v727_v17  ;;  %v1317_v63 = vpop.eup %1316  ;;  %v268_v17 = vld [vmem:[%s1695_s0 + $0x20] sm:$0xff] }
 0x33e   : > { %821 = vmatmul.mubr.bf16.vlgmr.msra.gmra.mrb[0].mxu1 %v780_v62  ;;  %v766_v3 = vmul.f32 %v1317_v63, %v1908_v6 }
 0x33f   : > { %830 = vmatprep.mubr.bf16.mxu1 %v1498_v33 }
 0x341   : > { %v1319_v0 = vpop.eup %1318 }
 0x342   : > { %v729_v1 = vpop.xlane.xlu0 %728  ;;  %v767_v4 = vmul.f32 %v1319_v0, %v1912_v10  ;;  %v269_v0 = vld [vmem:[%s1695_s0 + $0x28] sm:$0xff] }
 0x343   : > { %1324 = vrcp.f32 %v729_v1 }
 0x344   : > { %v731_v5 = vpop.xlane.xlu1 %730  ;;  %v781_v7 = vpack.c.bf16 %v767_v4, %v766_v3  ;;  %v270_v4 = vld [vmem:[%s1695_s0 + $0x30] sm:$0xff] }
 0x345   : > { %1326 = vrcp.f32 %v731_v5  ;;  %v1321_v61 = vpop.eup %1320 }
 0x346   : > { %831 = vmatmul.mubr.bf16.gmra.mrb[4].mxu1 %v781_v7  ;;  %v768_v11 = vmul.f32 %v1321_v61, %v1916_v14 }
 0x347   : > { %v1323_v2 = vpop.eup %1322  ;;  %840 = vmatprep.mubr.bf16.mxu1 %v1498_v33 }
 0x348   : > { %v769_v8 = vmul.f32 %v1323_v2, %v1919_v16  ;;  %v271_v2 = vld [vmem:[%s1695_s0 + $0x38] sm:$0xff] }
 0x34a   : > { %v733_v9 = vpop.xlane.xlu0 %732  ;;  %v782_v13 = vpack.c.bf16 %v769_v8, %v768_v11 }
 0x34b   : > { %1328 = vrcp.f32 %v733_v9 }
 0x34c   : > { %v735_v12 = vpop.xlane.xlu1 %734 }
 0x34d   : > { %1330 = vrcp.f32 %v735_v12  ;;  %v1325_v6 = vpop.eup %1324 }
 0x34e   : > { %841 = vmatmul.mubr.bf16.gmra.mrb[8].mxu1 %v782_v13  ;;  %v770_v19 = vmul.f32 %v1325_v6, %v1924_v23  ;;  %v272_v6 = vld [vmem:[%s1695_s0 + $0x40] sm:$0xff] }
 0x34f   : > { %v1327_v10 = vpop.eup %1326  ;;  %850 = vmatprep.mubr.bf16.mxu1 %v1498_v33 }
 0x350   : > { %v771_v15 = vmul.f32 %v1327_v10, %v1927_v25 }
 0x352   : > { %v737_v18 = vpop.xlane.xlu0 %736  ;;  %v783_v16 = vpack.c.bf16 %v771_v15, %v770_v19 }
 0x353   : > { %1332 = vrcp.f32 %v737_v18  ;;  %v273_v18 = vld [vmem:[%s1695_s0 + $0x48] sm:$0xff] }
 0x354   : > { %v739_v20 = vpop.xlane.xlu1 %738 }
 0x355   : > { %1334 = vrcp.f32 %v739_v20  ;;  %v1329_v21 = vpop.eup %1328 }
 0x356   : > { %851 = vmatmul.mubr.bf16.gmra.mrb[12].mxu1 %v783_v16  ;;  %v772_v26 = vmul.f32 %v1329_v21, %v1932_v31  ;;  %v274_v16 = vld [vmem:[%s1695_s0 + $0x50] sm:$0xff] }
 0x357   : > { %v1331_v14 = vpop.eup %1330  ;;  %860 = vmatprep.mubr.bf16.mxu1 %v1498_v33 }
 0x358   : > { %v773_v22 = vmul.f32 %v1331_v14, %v1936_v34 }
 0x35a   : > { %v741_v24 = vpop.xlane.xlu0 %740  ;;  %v784_v25 = vpack.c.bf16 %v773_v22, %v772_v26 }
 0x35b   : > { %1336 = vrcp.f32 %v741_v24  ;;  %v275_v24 = vld [vmem:[%s1695_s0 + $0x58] sm:$0xff] }
 0x35c   : > { %v743_v27 = vpop.xlane.xlu1 %742 }
 0x35d   : > { %1338 = vrcp.f32 %v743_v27  ;;  %v1333_v28 = vpop.eup %1332 }
 0x35e   : > { %861 = vmatmul.mubr.bf16.gmra.mrb[16].mxu1 %v784_v25  ;;  %v774_v32 = vmul.f32 %v1333_v28, %v1941_v40 }
 0x35f   : > { %v1335_v23 = vpop.eup %1334  ;;  %870 = vmatprep.mubr.bf16.mxu1 %v1498_v33 }
 0x360   : > { %v775_v29 = vmul.f32 %v1335_v23, %v1944_v42 }
 0x362   : > { %v745_v30 = vpop.xlane.xlu0 %744  ;;  %v785_v34 = vpack.c.bf16 %v775_v29, %v774_v32  ;;  %v276_v29 = vld [vmem:[%s1695_s0 + $0x60] sm:$0xff] }
 0x363   : > { %1340 = vrcp.f32 %v745_v30 }
 0x364   : > { %v747_v35 = vpop.xlane.xlu1 %746 }
 0x365   : > { %1342 = vrcp.f32 %v747_v35  ;;  %v1337_v36 = vpop.eup %1336  ;;  %v277_v35 = vld [vmem:[%s1695_s0 + $0x68] sm:$0xff] }
 0x366   : > { %871 = vmatmul.mubr.bf16.gmra.mrb[20].mxu1 %v785_v34  ;;  %v776_v38 = vmul.f32 %v1337_v36, %v1949_v48 }
 0x367   : > { %v1339_v31 = vpop.eup %1338  ;;  %880 = vmatprep.mubr.bf16.mxu1 %v1498_v33 }
 0x368   : > { %v777_v37 = vmul.f32 %v1339_v31, %v1952_v51  ;;  %v265_v51 = vld [vmem:[%s1695_s0 + $0x8] sm:$0xff]  ;;  %v278_v31 = vld [vmem:[%s1695_s0 + $0x70] sm:$0xff] }
 0x36a   : > { %v786_v39 = vpack.c.bf16 %v777_v37, %v776_v38 }
 0x36d   : > { %v1341_v41 = vpop.eup %1340 }
 0x36e   : > { %881 = vmatmul.mubr.bf16.gmra.mrb[24].mxu1 %v786_v39  ;;  %v778_v45 = vmul.f32 %v1341_v41, %v1955_v52  ;;  %v279_v41 = vld [vmem:[%s1695_s0 + $0x78] sm:$0xff] }
 0x36f   : > { %v1343_v40 = vpop.eup %1342  ;;  %890 = vmatprep.mubr.bf16.mxu1 %v1498_v33  ;;  %v266_v33 = vld [vmem:[%s1695_s0 + $0x10] sm:$0xff] }
 0x370   : > { %v779_v42 = vmul.f32 %v1343_v40, %v1958_v49 }
 0x372   : > { %v787_v43 = vpack.c.bf16 %v779_v42, %v778_v45 }
 0x376   : > { %891 = vmatmul.mubr.bf16.gmra.mrb[28].mxu1 %v787_v43 }
 0x411   : > { %v822_v44 = vpop.f32.mrb[0].mxu1 }
 0x412   : > { %v903_v48 = vmul.f32 %v1984_v46, %v822_v44  ;;  %v824_v50 = vpop.f32.mrb[1].mxu1  ;;  %v280_v44 = vld [vmem:[%s1695_s0 + $0x80] sm:$0xff] }
 0x413   : > { %v904_v53 = vmul.f32 %v1984_v46, %v824_v50  ;;  %v826_v49 = vpop.f32.mrb[2].mxu1  ;;  %v281_v50 = vld [vmem:[%s1695_s0 + $0x88] sm:$0xff] }
 0x414   : > { %v935_v54 = vadd.f32 %v903_v48, %v264_v47  ;;  %v905_v52 = vmul.f32 %v1984_v46, %v826_v49  ;;  %v828_v56 = vpop.f32.mrb[3].mxu1  ;;  %v282_v49 = vld [vmem:[%s1695_s0 + $0x90] sm:$0xff] }
 0x415   : > { %v936_v57 = vadd.f32 %v904_v53, %v265_v51  ;;  %v906_v58 = vmul.f32 %v1984_v46, %v828_v56  ;;  %v283_v56 = vld [vmem:[%s1695_s0 + $0x98] sm:$0xff] }
 0x416   : > { %967 = vst [vmem:[%s1996_s23] sm:$0xff] %v935_v54  ;;  %v937_v59 = vadd.f32 %v905_v52, %v266_v33 }
 0x417   : > { %968 = vst [vmem:[%s1996_s23 + $0x8] sm:$0xff] %v936_v57  ;;  %v938_v60 = vadd.f32 %v906_v58, %v267_v55 }
 0x418   : > { %969 = vst [vmem:[%s1996_s23 + $0x10] sm:$0xff] %v937_v59 }
 0x419   : > { %970 = vst [vmem:[%s1996_s23 + $0x18] sm:$0xff] %v938_v60  ;;  %v832_v62 = vpop.f32.mrb[4].mxu1 }
 0x41a   : > { %v907_v63 = vmul.f32 %v1984_v46, %v832_v62  ;;  %v834_v1 = vpop.f32.mrb[5].mxu1  ;;  %v284_v62 = vld [vmem:[%s1695_s0 + $0xa0] sm:$0xff] }
 0x41b   : > { %v908_v3 = vmul.f32 %v1984_v46, %v834_v1  ;;  %v836_v5 = vpop.f32.mrb[6].mxu1  ;;  %v285_v1 = vld [vmem:[%s1695_s0 + $0xa8] sm:$0xff] }
 0x41c   : > { %v939_v7 = vadd.f32 %v907_v63, %v268_v17  ;;  %v909_v61 = vmul.f32 %v1984_v46, %v836_v5  ;;  %v838_v8 = vpop.f32.mrb[7].mxu1  ;;  %v286_v5 = vld [vmem:[%s1695_s0 + $0xb0] sm:$0xff] }
 0x41d   : > { %v940_v9 = vadd.f32 %v908_v3, %v269_v0  ;;  %v910_v11 = vmul.f32 %v1984_v46, %v838_v8  ;;  %v287_v8 = vld [vmem:[%s1695_s0 + $0xb8] sm:$0xff] }
 0x41e   : > { %971 = vst [vmem:[%s1996_s23 + $0x20] sm:$0xff] %v939_v7  ;;  %v941_v12 = vadd.f32 %v909_v61, %v270_v4 }
 0x41f   : > { %972 = vst [vmem:[%s1996_s23 + $0x28] sm:$0xff] %v940_v9  ;;  %v942_v13 = vadd.f32 %v910_v11, %v271_v2 }
 0x420   : > { %973 = vst [vmem:[%s1996_s23 + $0x30] sm:$0xff] %v941_v12 }
 0x421   : > { %974 = vst [vmem:[%s1996_s23 + $0x38] sm:$0xff] %v942_v13  ;;  %v842_v10 = vpop.f32.mrb[8].mxu1 }
 0x422   : > { %v911_v15 = vmul.f32 %v1984_v46, %v842_v10  ;;  %v844_v19 = vpop.f32.mrb[9].mxu1  ;;  %v288_v10 = vld [vmem:[%s1695_s0 + $0xc0] sm:$0xff] }
 0x423   : > { %v912_v20 = vmul.f32 %v1984_v46, %v844_v19  ;;  %v846_v21 = vpop.f32.mrb[10].mxu1  ;;  %v289_v19 = vld [vmem:[%s1695_s0 + $0xc8] sm:$0xff] }
 0x424   : > { %v943_v14 = vadd.f32 %v911_v15, %v272_v6  ;;  %v913_v22 = vmul.f32 %v1984_v46, %v846_v21  ;;  %v848_v26 = vpop.f32.mrb[11].mxu1  ;;  %v290_v21 = vld [vmem:[%s1695_s0 + $0xd0] sm:$0xff] }
 0x425   : > { %v944_v27 = vadd.f32 %v912_v20, %v273_v18  ;;  %v914_v25 = vmul.f32 %v1984_v46, %v848_v26  ;;  %v291_v26 = vld [vmem:[%s1695_s0 + $0xd8] sm:$0xff] }
 0x426   : > { %975 = vst [vmem:[%s1996_s23 + $0x40] sm:$0xff] %v943_v14  ;;  %v945_v28 = vadd.f32 %v913_v22, %v274_v16 }
 0x427   : > { %976 = vst [vmem:[%s1996_s23 + $0x48] sm:$0xff] %v944_v27  ;;  %v946_v23 = vadd.f32 %v914_v25, %v275_v24 }
 0x428   : > { %977 = vst [vmem:[%s1996_s23 + $0x50] sm:$0xff] %v945_v28 }
 0x429   : > { %978 = vst [vmem:[%s1996_s23 + $0x58] sm:$0xff] %v946_v23  ;;  %v852_v30 = vpop.f32.mrb[12].mxu1 }
 0x42a   : > { %v915_v32 = vmul.f32 %v1984_v46, %v852_v30  ;;  %v854_v34 = vpop.f32.mrb[13].mxu1  ;;  %v292_v30 = vld [vmem:[%s1695_s0 + $0xe0] sm:$0xff] }
 0x42b   : > { %v916_v36 = vmul.f32 %v1984_v46, %v854_v34  ;;  %v856_v37 = vpop.f32.mrb[14].mxu1  ;;  %v293_v34 = vld [vmem:[%s1695_s0 + $0xe8] sm:$0xff] }
 0x42c   : > { %v947_v38 = vadd.f32 %v915_v32, %v276_v29  ;;  %v917_v39 = vmul.f32 %v1984_v46, %v856_v37  ;;  %v858_v40 = vpop.f32.mrb[15].mxu1  ;;  %v294_v37 = vld [vmem:[%s1695_s0 + $0xf0] sm:$0xff] }
 0x42d   : > { %v948_v42 = vadd.f32 %v916_v36, %v277_v35  ;;  %v918_v45 = vmul.f32 %v1984_v46, %v858_v40  ;;  %v295_v40 = vld [vmem:[%s1695_s0 + $0xf8] sm:$0xff] }
 0x42e   : > { %979 = vst [vmem:[%s1996_s23 + $0x60] sm:$0xff] %v947_v38  ;;  %v949_v43 = vadd.f32 %v917_v39, %v278_v31 }
 0x42f   : > { %980 = vst [vmem:[%s1996_s23 + $0x68] sm:$0xff] %v948_v42  ;;  %v950_v47 = vadd.f32 %v918_v45, %v279_v41 }
 0x430   : > { %981 = vst [vmem:[%s1996_s23 + $0x70] sm:$0xff] %v949_v43 }
 0x431   : > { %982 = vst [vmem:[%s1996_s23 + $0x78] sm:$0xff] %v950_v47  ;;  %v862_v48 = vpop.f32.mrb[16].mxu1 }
 0x432   : > { %v919_v51 = vmul.f32 %v1984_v46, %v862_v48  ;;  %v864_v53 = vpop.f32.mrb[17].mxu1 }
 0x433   : > { %v920_v33 = vmul.f32 %v1984_v46, %v864_v53  ;;  %v866_v54 = vpop.f32.mrb[18].mxu1 }
 0x434   : > { %v951_v52 = vadd.f32 %v919_v51, %v280_v44  ;;  %v921_v55 = vmul.f32 %v1984_v46, %v866_v54  ;;  %v868_v57 = vpop.f32.mrb[19].mxu1 }
 0x435   : > { %v952_v58 = vadd.f32 %v920_v33, %v281_v50  ;;  %v922_v59 = vmul.f32 %v1984_v46, %v868_v57 }
 0x436   : > { %983 = vst [vmem:[%s1996_s23 + $0x80] sm:$0xff] %v951_v52  ;;  %v953_v60 = vadd.f32 %v921_v55, %v282_v49 }
 0x437   : > { %984 = vst [vmem:[%s1996_s23 + $0x88] sm:$0xff] %v952_v58  ;;  %v954_v17 = vadd.f32 %v922_v59, %v283_v56 }
 0x438   : > { %985 = vst [vmem:[%s1996_s23 + $0x90] sm:$0xff] %v953_v60 }
 0x439   : > { %986 = vst [vmem:[%s1996_s23 + $0x98] sm:$0xff] %v954_v17  ;;  %v872_v63 = vpop.f32.mrb[20].mxu1 }
 0x43a   : > { %v923_v0 = vmul.f32 %v1984_v46, %v872_v63  ;;  %v874_v3 = vpop.f32.mrb[21].mxu1 }
 0x43b   : > { %v924_v4 = vmul.f32 %v1984_v46, %v874_v3  ;;  %v876_v7 = vpop.f32.mrb[22].mxu1 }
 0x43c   : > { %v955_v61 = vadd.f32 %v923_v0, %v284_v62  ;;  %v925_v2 = vmul.f32 %v1984_v46, %v876_v7  ;;  %v878_v9 = vpop.f32.mrb[23].mxu1 }
 0x43d   : > { %v956_v11 = vadd.f32 %v924_v4, %v285_v1  ;;  %v926_v12 = vmul.f32 %v1984_v46, %v878_v9 }
 0x43e   : > { %987 = vst [vmem:[%s1996_s23 + $0xa0] sm:$0xff] %v955_v61  ;;  %v957_v13 = vadd.f32 %v925_v2, %v286_v5 }
 0x43f   : > { %988 = vst [vmem:[%s1996_s23 + $0xa8] sm:$0xff] %v956_v11  ;;  %v958_v6 = vadd.f32 %v926_v12, %v287_v8 }
 0x440   : > { %989 = vst [vmem:[%s1996_s23 + $0xb0] sm:$0xff] %v957_v13 }
 0x441   : > { %990 = vst [vmem:[%s1996_s23 + $0xb8] sm:$0xff] %v958_v6  ;;  %v882_v15 = vpop.f32.mrb[24].mxu1 }
 0x442   : > { %v927_v18 = vmul.f32 %v1984_v46, %v882_v15  ;;  %v884_v20 = vpop.f32.mrb[25].mxu1 }
 0x443   : > { %v928_v16 = vmul.f32 %v1984_v46, %v884_v20  ;;  %v886_v14 = vpop.f32.mrb[26].mxu1 }
 0x444   : > { %v959_v22 = vadd.f32 %v927_v18, %v288_v10  ;;  %v929_v24 = vmul.f32 %v1984_v46, %v886_v14  ;;  %v888_v27 = vpop.f32.mrb[27].mxu1 }
 0x445   : > { %v960_v25 = vadd.f32 %v928_v16, %v289_v19  ;;  %v930_v28 = vmul.f32 %v1984_v46, %v888_v27 }
 0x446   : > { %991 = vst [vmem:[%s1996_s23 + $0xc0] sm:$0xff] %v959_v22  ;;  %v961_v23 = vadd.f32 %v929_v24, %v290_v21 }
 0x447   : > { %992 = vst [vmem:[%s1996_s23 + $0xc8] sm:$0xff] %v960_v25  ;;  %v962_v29 = vadd.f32 %v930_v28, %v291_v26 }
 0x448   : > { %993 = vst [vmem:[%s1996_s23 + $0xd0] sm:$0xff] %v961_v23 }
 0x449   : > { %994 = vst [vmem:[%s1996_s23 + $0xd8] sm:$0xff] %v962_v29  ;;  %v892_v32 = vpop.f32.mrb[28].mxu1 }
 0x44a   : > { %v931_v35 = vmul.f32 %v1984_v46, %v892_v32  ;;  %v894_v36 = vpop.f32.mrb[29].mxu1 }
 0x44b   : > { %v932_v31 = vmul.f32 %v1984_v46, %v894_v36  ;;  %v896_v38 = vpop.f32.mrb[30].mxu1 }
 0x44c   : > { %v963_v39 = vadd.f32 %v931_v35, %v292_v30  ;;  %v933_v41 = vmul.f32 %v1984_v46, %v896_v38  ;;  %v898_v42 = vpop.f32.mrb[31].mxu1 }
 0x44d   : > { %v964_v45 = vadd.f32 %v932_v31, %v293_v34  ;;  %v934_v43 = vmul.f32 %v1984_v46, %v898_v42 }
 0x44e   : > { %995 = vst [vmem:[%s1996_s23 + $0xe0] sm:$0xff] %v963_v39  ;;  %v965_v47 = vadd.f32 %v933_v41, %v294_v37 }
 0x44f   : > { %996 = vst [vmem:[%s1996_s23 + $0xe8] sm:$0xff] %v964_v45  ;;  %v966_v44 = vadd.f32 %v934_v43, %v295_v40 }
 0x450   : > { %997 = vst [vmem:[%s1996_s23 + $0xf0] sm:$0xff] %v965_v47 }
 0x451   : > { %998 = vst [vmem:[%s1996_s23 + $0xf8] sm:$0xff] %v966_v44 }
 0x452   : > { %1417 = shalt.err (!%p1414_p9)
}
 0x453   : > { %s1418_s4 = scalar_lea.hbm %s2088_s13, 4096  ;;  %s1422_s29 = scalar_lea.hbm %s2145_s3, 8192 }
 0x454   : > { %p1419_p1 = scmp.ne.s32.totalorder %s2088_s13, %s1418_s4  ;;  %p1423_p5 = scmp.lt.u32.totalorder %s2088_s13, %s2145_s3 }
 0x455   : > { %p1424_p4 = scmp.lt.u32.totalorder %s1422_s29, %s1418_s4  ;;  %p1426_p0 = scmp.lt.u32.totalorder %s1418_s4, %s2088_s13 }
 0x456   : > { %p1420_p6 = pnand %p1419_p1, %p2156_p3 }
 0x457   : > { %p1425_p8 = por %p1424_p4, %p1423_p5 }
 0x458   : > { %p1421_p2 = pneg %p1420_p6 }
 0x459   : > { %p1427_p11 = por %p1426_p0, %p1425_p8 }
 0x45b   : > { %p1428_p13 = pnand %p1427_p11, %p1421_p2 }
 0x45d   : > { %1431 = shalt.err (!%p1428_p13)
}
 0x45e   : > { %s1500_s25 = smov 256   ;;  %s1501_s23 = smov 16  }
 0x45f   : > { %1186 = dma.vmem_to_hbm [thread:$0]  (%p2156_p3), %s2090_s7, 4096, %s2088_s13, %s1000_s17, %s1500_s25, %s1500_s25, %s1501_s23  }
 0x460 PF: > { %s1031_s30 = sand.u32 1, %s1470_s14   ;;  %p2157_p7 = scmp.ne.s32.totalorder %s2151_s28, 0 }
 0x461   : > { %p2158_p10 = scmp.ge.s32.totalorder %s1490_s19, 2  ;;  %s1032_s8 = scalar_lea.sflag [#allocation6], %s1031_s30 }
 0x463   : > { %p1196_p12 = pnand %p2158_p10, %p2157_p7 }
 0x465   : > { %1465 = dma.done.wait (!%p1196_p12), %s1032_s8, 4096  }
 0x466   : > { %1467 = vsyncadd (!%p1196_p12), %s1032_s8, 4294963200  ;;  %s23_s19 = sadd.s32 1, %s1490_s19   ;;  %s2159_s14 = smov %s1474_s15 }
 0x467   : > { %p20_p9 = scmp.ge.s32.totalorder %s23_s19, 4   ;;  %s2160_s15 = smov %s1478_s16 }
 0x468   : > { %s2161_s16 = smov %s1581_s27  ;;  %s2162_s17 = smov %s1486_s18 }
 0x469   : > { %s2163_s18 = smov %s2165_s21  ;;  %22 = sbr.rel (!%p20_p9) target bundleno = 10 (0xa), region = 87 }
 0x470   :  { %1037 = vsyncpa [#allocation5], 1 }
 0x471   :  { %1039 = vsyncpa [#allocation5 + $0x1], 1 }
 0x472   :  { %1040 = vsyncpa [#allocation8], 1 }
 0x473   :  { %1042 = vsyncpa [#allocation8 + $0x1], 1 }
 0x474   :  { %1043 = vsyncpa [#allocation6], 1 }
 0x475   :  { %1045 = vsyncpa [#allocation6 + $0x1], 1 }

</bundles_post_ra>
